<compile_context>
chip_gen: v7x
topology: tpu7x:2x2x1
jax: 0.10.0
libtpu: 0.0.40
codegen_flags: <defaults>
</compile_context>

<pallas_src>
import functools

import jax
import jax.numpy as jnp
import numpy as np
from jax.experimental import pallas as pl
from jax.experimental.pallas import tpu as pltpu


def _covariance_kernel(x_ref, y_ref, o_ref, *, patch):
    # x_ref, y_ref: (Nb, C, H, W) f32; o_ref: (Nb, Hout, Wout) f32 (VMEM tiles).
    P = patch
    Nb, C, H, W = x_ref.shape
    H1, W1 = H - P + 1, W - P + 1          # after stage-1 "valid" conv
    H2, W2 = H1 - P + 1, W1 - P + 1        # after the final "valid" conv
    inv = jnp.float32(1.0 / (P * P))
    c = P // 2

    x = x_ref[...].astype(jnp.float32)
    y = y_ref[...].astype(jnp.float32)

    # Both masks are constant over the channel pair, so every output channel
    # is identical and the input-channel contraction is a plain channel sum.
    xs = jnp.sum(x, axis=1)                # (Nb, H, W)
    ys = jnp.sum(y, axis=1)

    def box_sum(a, h_out, w_out):
        # Separable PxP box *sum* over valid windows of the last two axes:
        # P shifted-slice adds along W (lanes), then P along H (sublanes),
        # instead of the non-separable P*P form.
        acc = a[..., :, 0:w_out]
        for dj in range(1, P):
            acc = acc + a[..., :, dj:dj + w_out]
        out = acc[..., 0:h_out, :]
        for di in range(1, P):
            out = out + acc[..., di:di + h_out, :]
        return out

    # conv2d(., ones_mask) = window-center pick; conv2d(., mean_mask) = box mean.
    dx = xs[:, c:c + H1, c:c + W1] - box_sum(xs, H1, W1) * inv
    dy = ys[:, c:c + H1, c:c + W1] - box_sum(ys, H1, W1) * inv
    prod = dx * dy                          # (Nb, H1, W1)

    # Final conv2d(prod, mean_mask): the sum over C identical input channels
    # contributes a factor of C.
    out = box_sum(prod, H2, W2) * (inv * jnp.float32(C))
    o_ref[...] = out.astype(o_ref.dtype)


def _pick_batch_block(n, c, h, w, itemsize=4, target_bytes=4 * 1024 * 1024):
    """Batch elements per grid step: few-MiB working set, grid >= 2, Nb | N."""
    per_elem = 2 * c * h * w * itemsize          # x + y bytes per batch element
    nb = max(1, target_bytes // per_elem)
    nb = int(min(nb, n))
    if n >= 2:
        nb = min(nb, (n + 1) // 2)               # keep >= 2 grid steps (v7x megacore)
    while n % nb:                                # avoid partial batch blocks
        nb -= 1
    return max(1, nb)


def covariance_layer(x, y, patch_size=5):
    """Pallas implementation of CovarianceLayer.forward(x, y). x, y: (N, C, H, W)."""
    N, C, H, W = x.shape
    P = patch_size
    Hout = H - 2 * (P - 1)
    Wout = W - 2 * (P - 1)
    assert Hout > 0 and Wout > 0, "image too small for two valid PxP convs"

    nb = _pick_batch_block(N, C, H, W)
    grid = N // nb

    kernel = functools.partial(_covariance_kernel, patch=P)

    # Scoped-VMEM budget: double-buffered input blocks + output block + slack
    # for in-kernel temporaries; clamped to fit v7x's 64 MiB physical VMEM.
    block_bytes = (2 * 2 * nb * C * H * W + 2 * nb * Hout * Wout) * 4
    vmem_limit = int(min(48 * 2**20, max(32 * 2**20, 8 * block_bytes)))

    out = pl.pallas_call(
        kernel,
        out_shape=jax.ShapeDtypeStruct((N, Hout, Wout), jnp.float32),
        grid_spec=pltpu.PrefetchScalarGridSpec(
            num_scalar_prefetch=0,
            grid=(grid,),
            in_specs=[
                pl.BlockSpec((nb, C, H, W), lambda n: (n, 0, 0, 0)),
                pl.BlockSpec((nb, C, H, W), lambda n: (n, 0, 0, 0)),
            ],
            out_specs=pl.BlockSpec((nb, Hout, Wout), lambda n: (n, 0, 0)),
        ),
        compiler_params=pltpu.CompilerParams(
            dimension_semantics=("parallel",),
            vmem_limit_bytes=vmem_limit,
        ),
    )(x, y)

    # All C output channels of the original module are identical; broadcast
    # wrapper-side so the kernel only writes 1/C of the output bytes.
    return jnp.broadcast_to(out[:, None, :, :], (N, C, Hout, Wout))


# ---------------------------------------------------------------------------
# Pure-JAX reference (lax.conv) for verification, mirroring the PyTorch code.
# ---------------------------------------------------------------------------
def _conv_valid(x, w):
    return jax.lax.conv_general_dilated(
        x, w, window_strides=(1, 1), padding="VALID",
        dimension_numbers=("NCHW", "OIHW", "NCHW"),
        precision=jax.lax.Precision.HIGHEST)


def covariance_layer_ref(x, y, patch_size=5, channels=1):
    P = patch_size
    mean_mask = jnp.full((channels, channels, P, P), 1.0 / (P * P), jnp.float32)
    ones_mask = np.zeros((channels, channels, P, P), np.float32)
    ones_mask[:, :, P // 2, P // 2] = 1.0
    ones_mask = jnp.asarray(ones_mask)
    dx = _conv_valid(x, ones_mask) - _conv_valid(x, mean_mask)
    dy = _conv_valid(y, ones_mask) - _conv_valid(y, mean_mask)
    return _conv_valid(dx * dy, mean_mask)


if __name__ == "__main__":
    key = jax.random.PRNGKey(0)

    # Module defaults: patch_size=5, channels=1 (plus a multi-channel check).
    for (N, C, H, W) in [(2, 1, 16, 16), (2, 3, 20, 24)]:
        kx, ky, key = jax.random.split(key, 3)
        x = jax.random.normal(kx, (N, C, H, W), dtype=jnp.float32)
        y = jax.random.normal(ky, (N, C, H, W), dtype=jnp.float32)

        out = jax.block_until_ready(covariance_layer(x, y, patch_size=5))
        ref = jax.block_until_ready(
            covariance_layer_ref(x, y, patch_size=5, channels=C))

        assert out.shape == (N, C, H - 8, W - 8), out.shape
        np.testing.assert_allclose(np.asarray(out), np.asarray(ref),
                                   rtol=1e-4, atol=1e-5)

    print("KERNEL_OK")
</pallas_src>

<mosaic_0001>
module attributes {stable_mosaic.version = 11 : i64} {
  func.func @_covariance_kernel(%arg0: i32, %arg1: memref<1x1x16x16xf32, #tpu.memory_space<vmem>>, %arg2: memref<1x1x16x16xf32, #tpu.memory_space<vmem>>, %arg3: memref<1x8x8xf32, #tpu.memory_space<vmem>>) attributes {dimension_semantics = [#tpu.dimension_semantics<parallel>], iteration_bounds = array<i64: 2>, scalar_prefetch = 0 : i64, scratch_operands = 0 : i64, tpu.core_type = #tpu.core_type<tc>, window_params = [{transform_indices = @transform_0, window_bounds = array<i64: 1, 1, 16, 16>}, {transform_indices = @transform_1, window_bounds = array<i64: 1, 1, 16, 16>}, {transform_indices = @transform_2, window_bounds = array<i64: 1, 8, 8>}]} {
    %c0 = arith.constant 0 : index
    %c0_0 = arith.constant 0 : index
    %c0_1 = arith.constant 0 : index
    %c0_2 = arith.constant 0 : index
    %0 = vector.load %arg1[%c0, %c0_0, %c0_1, %c0_2] : memref<1x1x16x16xf32, #tpu.memory_space<vmem>>, vector<1x1x16x16xf32>
    %c0_3 = arith.constant 0 : index
    %c0_4 = arith.constant 0 : index
    %c0_5 = arith.constant 0 : index
    %c0_6 = arith.constant 0 : index
    %1 = vector.load %arg2[%c0_3, %c0_4, %c0_5, %c0_6] : memref<1x1x16x16xf32, #tpu.memory_space<vmem>>, vector<1x1x16x16xf32>
    %cst = arith.constant dense<0.000000e+00> : vector<1x16x16xf32>
    %2 = vector.multi_reduction <add>, %0, %cst [1] : vector<1x1x16x16xf32> to vector<1x16x16xf32>
    %cst_7 = arith.constant dense<0.000000e+00> : vector<1x16x16xf32>
    %3 = vector.multi_reduction <add>, %1, %cst_7 [1] : vector<1x1x16x16xf32> to vector<1x16x16xf32>
    %4 = vector.extract_strided_slice %2 {offsets = [0, 2, 2], sizes = [1, 12, 12], strides = [1, 1, 1]} : vector<1x16x16xf32> to vector<1x12x12xf32>
    %5 = vector.extract_strided_slice %2 {offsets = [0, 0, 0], sizes = [1, 16, 12], strides = [1, 1, 1]} : vector<1x16x16xf32> to vector<1x16x12xf32>
    %6 = vector.extract_strided_slice %2 {offsets = [0, 0, 1], sizes = [1, 16, 12], strides = [1, 1, 1]} : vector<1x16x16xf32> to vector<1x16x12xf32>
    %7 = arith.addf %5, %6 : vector<1x16x12xf32>
    %8 = vector.extract_strided_slice %2 {offsets = [0, 0, 2], sizes = [1, 16, 12], strides = [1, 1, 1]} : vector<1x16x16xf32> to vector<1x16x12xf32>
    %9 = arith.addf %7, %8 : vector<1x16x12xf32>
    %10 = vector.extract_strided_slice %2 {offsets = [0, 0, 3], sizes = [1, 16, 12], strides = [1, 1, 1]} : vector<1x16x16xf32> to vector<1x16x12xf32>
    %11 = arith.addf %9, %10 : vector<1x16x12xf32>
    %12 = vector.extract_strided_slice %2 {offsets = [0, 0, 4], sizes = [1, 16, 12], strides = [1, 1, 1]} : vector<1x16x16xf32> to vector<1x16x12xf32>
    %13 = arith.addf %11, %12 : vector<1x16x12xf32>
    %14 = vector.extract_strided_slice %13 {offsets = [0, 0, 0], sizes = [1, 12, 12], strides = [1, 1, 1]} : vector<1x16x12xf32> to vector<1x12x12xf32>
    %15 = vector.extract_strided_slice %13 {offsets = [0, 1, 0], sizes = [1, 12, 12], strides = [1, 1, 1]} : vector<1x16x12xf32> to vector<1x12x12xf32>
    %16 = arith.addf %14, %15 : vector<1x12x12xf32>
    %17 = vector.extract_strided_slice %13 {offsets = [0, 2, 0], sizes = [1, 12, 12], strides = [1, 1, 1]} : vector<1x16x12xf32> to vector<1x12x12xf32>
    %18 = arith.addf %16, %17 : vector<1x12x12xf32>
    %19 = vector.extract_strided_slice %13 {offsets = [0, 3, 0], sizes = [1, 12, 12], strides = [1, 1, 1]} : vector<1x16x12xf32> to vector<1x12x12xf32>
    %20 = arith.addf %18, %19 : vector<1x12x12xf32>
    %21 = vector.extract_strided_slice %13 {offsets = [0, 4, 0], sizes = [1, 12, 12], strides = [1, 1, 1]} : vector<1x16x12xf32> to vector<1x12x12xf32>
    %22 = arith.addf %20, %21 : vector<1x12x12xf32>
    %cst_8 = arith.constant 4.000000e-02 : f32
    %23 = vector.broadcast %cst_8 : f32 to vector<1x12x12xf32>
    %24 = arith.mulf %22, %23 : vector<1x12x12xf32>
    %25 = arith.subf %4, %24 : vector<1x12x12xf32>
    %26 = vector.extract_strided_slice %3 {offsets = [0, 2, 2], sizes = [1, 12, 12], strides = [1, 1, 1]} : vector<1x16x16xf32> to vector<1x12x12xf32>
    %27 = vector.extract_strided_slice %3 {offsets = [0, 0, 0], sizes = [1, 16, 12], strides = [1, 1, 1]} : vector<1x16x16xf32> to vector<1x16x12xf32>
    %28 = vector.extract_strided_slice %3 {offsets = [0, 0, 1], sizes = [1, 16, 12], strides = [1, 1, 1]} : vector<1x16x16xf32> to vector<1x16x12xf32>
    %29 = arith.addf %27, %28 : vector<1x16x12xf32>
    %30 = vector.extract_strided_slice %3 {offsets = [0, 0, 2], sizes = [1, 16, 12], strides = [1, 1, 1]} : vector<1x16x16xf32> to vector<1x16x12xf32>
    %31 = arith.addf %29, %30 : vector<1x16x12xf32>
    %32 = vector.extract_strided_slice %3 {offsets = [0, 0, 3], sizes = [1, 16, 12], strides = [1, 1, 1]} : vector<1x16x16xf32> to vector<1x16x12xf32>
    %33 = arith.addf %31, %32 : vector<1x16x12xf32>
    %34 = vector.extract_strided_slice %3 {offsets = [0, 0, 4], sizes = [1, 16, 12], strides = [1, 1, 1]} : vector<1x16x16xf32> to vector<1x16x12xf32>
    %35 = arith.addf %33, %34 : vector<1x16x12xf32>
    %36 = vector.extract_strided_slice %35 {offsets = [0, 0, 0], sizes = [1, 12, 12], strides = [1, 1, 1]} : vector<1x16x12xf32> to vector<1x12x12xf32>
    %37 = vector.extract_strided_slice %35 {offsets = [0, 1, 0], sizes = [1, 12, 12], strides = [1, 1, 1]} : vector<1x16x12xf32> to vector<1x12x12xf32>
    %38 = arith.addf %36, %37 : vector<1x12x12xf32>
    %39 = vector.extract_strided_slice %35 {offsets = [0, 2, 0], sizes = [1, 12, 12], strides = [1, 1, 1]} : vector<1x16x12xf32> to vector<1x12x12xf32>
    %40 = arith.addf %38, %39 : vector<1x12x12xf32>
    %41 = vector.extract_strided_slice %35 {offsets = [0, 3, 0], sizes = [1, 12, 12], strides = [1, 1, 1]} : vector<1x16x12xf32> to vector<1x12x12xf32>
    %42 = arith.addf %40, %41 : vector<1x12x12xf32>
    %43 = vector.extract_strided_slice %35 {offsets = [0, 4, 0], sizes = [1, 12, 12], strides = [1, 1, 1]} : vector<1x16x12xf32> to vector<1x12x12xf32>
    %44 = arith.addf %42, %43 : vector<1x12x12xf32>
    %cst_9 = arith.constant 4.000000e-02 : f32
    %45 = vector.broadcast %cst_9 : f32 to vector<1x12x12xf32>
    %46 = arith.mulf %44, %45 : vector<1x12x12xf32>
    %47 = arith.subf %26, %46 : vector<1x12x12xf32>
    %48 = arith.mulf %25, %47 : vector<1x12x12xf32>
    %49 = vector.extract_strided_slice %48 {offsets = [0, 0, 0], sizes = [1, 12, 8], strides = [1, 1, 1]} : vector<1x12x12xf32> to vector<1x12x8xf32>
    %50 = vector.extract_strided_slice %48 {offsets = [0, 0, 1], sizes = [1, 12, 8], strides = [1, 1, 1]} : vector<1x12x12xf32> to vector<1x12x8xf32>
    %51 = arith.addf %49, %50 : vector<1x12x8xf32>
    %52 = vector.extract_strided_slice %48 {offsets = [0, 0, 2], sizes = [1, 12, 8], strides = [1, 1, 1]} : vector<1x12x12xf32> to vector<1x12x8xf32>
    %53 = arith.addf %51, %52 : vector<1x12x8xf32>
    %54 = vector.extract_strided_slice %48 {offsets = [0, 0, 3], sizes = [1, 12, 8], strides = [1, 1, 1]} : vector<1x12x12xf32> to vector<1x12x8xf32>
    %55 = arith.addf %53, %54 : vector<1x12x8xf32>
    %56 = vector.extract_strided_slice %48 {offsets = [0, 0, 4], sizes = [1, 12, 8], strides = [1, 1, 1]} : vector<1x12x12xf32> to vector<1x12x8xf32>
    %57 = arith.addf %55, %56 : vector<1x12x8xf32>
    %58 = vector.extract_strided_slice %57 {offsets = [0, 0, 0], sizes = [1, 8, 8], strides = [1, 1, 1]} : vector<1x12x8xf32> to vector<1x8x8xf32>
    %59 = vector.extract_strided_slice %57 {offsets = [0, 1, 0], sizes = [1, 8, 8], strides = [1, 1, 1]} : vector<1x12x8xf32> to vector<1x8x8xf32>
    %60 = arith.addf %58, %59 : vector<1x8x8xf32>
    %61 = vector.extract_strided_slice %57 {offsets = [0, 2, 0], sizes = [1, 8, 8], strides = [1, 1, 1]} : vector<1x12x8xf32> to vector<1x8x8xf32>
    %62 = arith.addf %60, %61 : vector<1x8x8xf32>
    %63 = vector.extract_strided_slice %57 {offsets = [0, 3, 0], sizes = [1, 8, 8], strides = [1, 1, 1]} : vector<1x12x8xf32> to vector<1x8x8xf32>
    %64 = arith.addf %62, %63 : vector<1x8x8xf32>
    %65 = vector.extract_strided_slice %57 {offsets = [0, 4, 0], sizes = [1, 8, 8], strides = [1, 1, 1]} : vector<1x12x8xf32> to vector<1x8x8xf32>
    %66 = arith.addf %64, %65 : vector<1x8x8xf32>
    %cst_10 = arith.constant 4.000000e-02 : f32
    %cst_11 = arith.constant 1.000000e+00 : f32
    %67 = arith.mulf %cst_10, %cst_11 : f32
    %68 = vector.broadcast %67 : f32 to vector<1x8x8xf32>
    %69 = arith.mulf %66, %68 : vector<1x8x8xf32>
    %c0_12 = arith.constant 0 : index
    %c0_13 = arith.constant 0 : index
    %c0_14 = arith.constant 0 : index
    %70 = vector.load %arg3[%c0_12, %c0_13, %c0_14] : memref<1x8x8xf32, #tpu.memory_space<vmem>>, vector<1x8x8xf32>
    tpu.vector_store %arg3[%c0_12, %c0_13, %c0_14], %69 {strides = array<i32>} : memref<1x8x8xf32, #tpu.memory_space<vmem>>, vector<1x8x8xf32>,
    return
  }
  func.func @transform_0(%arg0: i32) -> (i32, i32, i32, i32) {
    %c0_i32 = arith.constant 0 : i32
    %c0_i32_0 = arith.constant 0 : i32
    %c0_i32_1 = arith.constant 0 : i32
    %c0_i32_2 = arith.constant 0 : i32
    return %arg0, %c0_i32, %c0_i32_0, %c0_i32_1 : i32, i32, i32, i32
  }
  func.func @transform_1(%arg0: i32) -> (i32, i32, i32, i32) {
    %c0_i32 = arith.constant 0 : i32
    %c0_i32_0 = arith.constant 0 : i32
    %c0_i32_1 = arith.constant 0 : i32
    %c0_i32_2 = arith.constant 0 : i32
    return %arg0, %c0_i32, %c0_i32_0, %c0_i32_1 : i32, i32, i32, i32
  }
  func.func @transform_2(%arg0: i32) -> (i32, i32, i32) {
    %c0_i32 = arith.constant 0 : i32
    %c0_i32_0 = arith.constant 0 : i32
    %c0_i32_1 = arith.constant 0 : i32
    return %arg0, %c0_i32, %c0_i32_0 : i32, i32, i32
  }
}

</mosaic_0001>

<bundles_post_ra>
// kernel: tpu_custom_call.1
= control target key start
LH: loop header
LB: loop body
LE: loop exit
PB: predicated region body
PF: predicated region fallthrough
CT: control target
= control target key end

     0   :  { %7 = vsyncpa [#allocation3], 0  ;;  %s1086_s0 = inlined_call_operand.hbm [shape: f32[2,1,16,16], index: 0, kind: input, shape index: {}]   ;;  %s1087_s1 = inlined_call_operand.hbm [shape: f32[2,1,16,16], index: 1, kind: input, shape index: {}]   ;;  %s1088_s2 = inlined_call_operand.hbm [shape: f32[2,8,8], index: 2, kind: output, shape index: {}]  }
   0x1   :  { %9 = vsyncpa [#allocation3 + $0x1], 0 }
   0x2   :  { %10 = vsyncpa [#allocation6], 0 }
   0x3   :  { %12 = vsyncpa [#allocation6 + $0x1], 0 }
   0x4   :  { %13 = vsyncpa [#allocation4], 0 }
   0x5   :  { %15 = vsyncpa [#allocation4 + $0x1], 0  ;;  %s794_s9 = smov 0   ;;  %s796_s10 = smov 0  }
   0x6   :  { %s798_s11 = smov 0   ;;  %s800_s12 = smov 0  }
   0x7 LB: > { %s815_s13 = sadd.s32 4294967295, %s767_s12   ;;  %s560_s14 = sadd.s32 4294967294, %s767_s12   ;;  %s767_s12 = sphi %s800_s12, %s1104_s12   ;;  %s763_s11 = sphi %s798_s11, %s1103_s11   ;;  %s759_s10 = sphi %s796_s10, %s1102_s10   ;;  %s755_s9 = sphi %s794_s9, %s1101_s9  }
   0x8   : > { %s819_s15 = sadd.s32 1, %s767_s12   ;;  %s28_s16 = sadd.s32 1, %s763_s11 }
   0x9   : > { %s25_s17 = ssub.s32 %s767_s12, %s819_s15  ;;  %p35_p0 = scmp.ne.s32.totalorder %s763_s11, %s759_s10 }
   0xa   : > { %p26_p1 = scmp.eq.s32.totalorder %s25_s17, 0  ;;  %p36_p2 = scmp.eq.s32.totalorder %s767_s12, 0 }
   0xb   : > { %p41_p3 = scmp.ne.s32.totalorder %s759_s10, %s755_s9  ;;  %p42_p4 = scmp.eq.s32.totalorder %s815_s13, 0 }
   0xc   : > { %s831_s18 = scalar_select %p26_p1, %s763_s11, %s28_s16  }
   0xd   : > { %p833_p5 = por %p36_p2, %p35_p0  ;;  %p837_p6 = por %p42_p4, %p41_p3 }
   0xe   : > { %p91_p7 = scmp.eq.s32.totalorder %s815_s13, 1  ;;  %p97_p8 = scmp.eq.s32.totalorder %s560_s14, 1 }
   0xf   : > { %s1092_s20 = scalar_select %p837_p6, 1, 0 }
  0x10   : > { %p596_p10 = scmp.lt.s32.totalorder %s767_s12, 2  ;;  %p844_p11 = por %p91_p7, %p35_p0 }
  0x11   : > { %p848_p12 = por %p97_p8, %p41_p3  ;;  %s853_s23 = sand.u32 1, %s763_s11  }
  0x12   : > { %s1093_s21 = scalar_select %p844_p11, 1, 0 }
  0x13   : > { %s1094_s22 = scalar_select %p848_p12, 1, 0 }
  0x14   : > { %s577_s24 = sshll.u32 %s767_s12, 8  ;;  %s563_s25 = sshll.u32 %s853_s23, 4 }
  0x15   : > { %s862_s28 = scalar_lea.hbm %s1086_s0, %s577_s24  ;;  %s121_s29 = scalar_lea.vmem [#allocation2], %s563_s25 }
  0x16   : > { %s128_s30 = sshll.u32 %s121_s29, 4  ;;  %p868_p13 = pnand %p596_p10, %p833_p5  ;;  %s872_s30 = int_to_ptr.vmem [resolvable:$true] %s128_s30 }
  0x17   : > { %s118_s4 = scalar_lea.sflag [#allocation3], %s853_s23  ;;  %s637_s5 = scalar_lea.hbm %s862_s28, 256 }
  0x18   : > { %p638_p0 = scmp.ne.s32.totalorder %s862_s28, %s637_s5  ;;  %p639_p1 = pneg %p868_p13 }
  0x19   : > { %s642_s8 = scalar_lea.hbm %s1086_s0, 512  ;;  %p643_p4 = scmp.lt.u32.totalorder %s862_s28, %s1086_s0 }
  0x1a   : > { %p640_p2 = pnand %p639_p1, %p638_p0  ;;  %p644_p5 = scmp.lt.u32.totalorder %s642_s8, %s637_s5 }
  0x1b   : > { %p646_p8 = scmp.lt.u32.totalorder %s637_s5, %s862_s28 }
  0x1c   : > { %p641_p3 = pneg %p640_p2  ;;  %p645_p7 = por %p644_p5, %p643_p4 }
  0x1e   : > { %p647_p10 = por %p646_p8, %p645_p7 }
  0x20   : > { %p648_p9 = pnand %p647_p10, %p641_p3 }
  0x22   : > { %651 = shalt.err (!%p648_p9)
}
  0x23   : > { %s652_s17 = scalar_lea.vmem %s872_s30, 256  ;;  %s769_s19 = smov [#allocation2]  }
  0x24   : > { %p653_p0 = scmp.ne.s32.totalorder %s872_s30, %s652_s17  ;;  %s657_s26 = sshll.u32 %s769_s19, 4  ;;  %s658_s26 = int_to_ptr.vmem [resolvable:$false] %s657_s26 }
  0x25   : > { %s659_s27 = scalar_lea.vmem %s658_s26, 512  ;;  %p660_p11 = scmp.lt.s32.totalorder %s872_s30, %s658_s26 }
  0x26   : > { %p655_p2 = pnand %p653_p0, %p639_p1  ;;  %p661_p4 = scmp.lt.s32.totalorder %s659_s27, %s652_s17 }
  0x28   : > { %p656_p12 = pneg %p655_p2  ;;  %p662_p5 = por %p661_p4, %p660_p11 }
  0x2a   : > { %p663_p7 = pnand %p662_p5, %p656_p12 }
  0x2c   : > { %666 = shalt.err (!%p663_p7)
}
  0x2d   : > { %s770_s29 = smov 128   ;;  %s771_s5 = smov 8  }
  0x2e   : > { %588 = dma.hbm_to_vmem [thread:$0]  (!%p868_p13), %s862_s28, 256, %s872_s30, %s118_s4, %s770_s29, %s770_s29, %s771_s5  }
  0x2f   : > { %p569_p9 = scmp.ge.s32.totalorder %s767_s12, 1  ;;  %p157_p11 = scmp.lt.s32.totalorder %s767_s12, 3 }
  0x30   : > { %s916_s14 = scalar_lea.hbm %s1087_s1, %s577_s24  ;;  %s142_s16 = scalar_lea.vmem [#allocation5], %s563_s25 }
  0x31   : > { %p907_p12 = pnand %p569_p9, %p157_p11  ;;  %s149_s17 = sshll.u32 %s142_s16, 4  ;;  %s920_s17 = int_to_ptr.vmem [resolvable:$true] %s149_s17 }
  0x32   : > { %s139_s28 = scalar_lea.sflag [#allocation6], %s853_s23  ;;  %s667_s30 = scalar_lea.hbm %s916_s14, 256 }
  0x33   : > { %p668_p3 = scmp.ne.s32.totalorder %s916_s14, %s667_s30  ;;  %s672_s24 = scalar_lea.hbm %s1087_s1, 512 }
  0x34   : > { %p673_p0 = scmp.lt.u32.totalorder %s916_s14, %s1087_s1  ;;  %p674_p2 = scmp.lt.u32.totalorder %s672_s24, %s667_s30 }
  0x35   : > { %p670_p8 = pnand %p668_p3, %p639_p1  ;;  %p676_p5 = scmp.lt.u32.totalorder %s667_s30, %s916_s14 }
  0x36   : > { %p675_p4 = por %p674_p2, %p673_p0 }
  0x37   : > { %p671_p10 = pneg %p670_p8 }
  0x38   : > { %p677_p7 = por %p676_p5, %p675_p4 }
  0x3a   : > { %p678_p9 = pnand %p677_p7, %p671_p10 }
  0x3c   : > { %681 = shalt.err (!%p678_p9)
}
  0x3d   : > { %s682_s25 = scalar_lea.vmem %s920_s17, 256  ;;  %s772_s7 = smov [#allocation5]  }
  0x3e   : > { %p683_p11 = scmp.ne.s32.totalorder %s920_s17, %s682_s25  ;;  %s687_s8 = sshll.u32 %s772_s7, 4  ;;  %s688_s8 = int_to_ptr.vmem [resolvable:$false] %s687_s8 }
  0x3f   : > { %s689_s16 = scalar_lea.vmem %s688_s8, 512  ;;  %p690_p6 = scmp.lt.s32.totalorder %s920_s17, %s688_s8 }
  0x40   : > { %p685_p3 = pnand %p683_p11, %p639_p1  ;;  %p691_p0 = scmp.lt.s32.totalorder %s689_s16, %s682_s25 }
  0x42   : > { %p686_p8 = pneg %p685_p3  ;;  %p692_p2 = por %p691_p0, %p690_p6 }
  0x44   : > { %p693_p4 = pnand %p692_p2, %p686_p8 }
  0x46   : > { %696 = shalt.err (!%p693_p4)
}
  0x47   : > { %591 = dma.hbm_to_vmem [thread:$0]  (!%p868_p13), %s916_s14, 256, %s920_s17, %s139_s28, %s770_s29, %s770_s29, %s771_s5  }
  0x48   : > { %161 = sbr.rel (%p907_p12) target bundleno = 635 (0x27b), region = 28  ;;  %s954_s30 = sand.u32 (!%p907_p12), 1, %s759_s10  }
  0x49   : > { %s570_s4 = sshll.u32 (!%p907_p12), %s954_s30, 4  ;;  %s164_s19 = scalar_lea.sflag (!%p907_p12), [#allocation3], %s954_s30 }
  0x4a   : > { %s167_s3 = scalar_lea.vmem (!%p907_p12), [#allocation2], %s570_s4  ;;  %p1097_p6 = scmp.ne.s32.totalorder (!%p907_p12), %s1092_s20, 0 }
  0x4f   : > { %742 = dma.done.wait (%p1097_p6), %s164_s19, 256  }
  0x50   : > { %744 = vsyncadd (%p1097_p6), %s164_s19, 4294967040  ;;  %s173_s23 = scalar_lea.sflag [#allocation6], %s954_s30  ;;  %s176_s29 = scalar_lea.vmem [#allocation5], %s570_s4 }
  0x51   : > { %746 = dma.done.wait (%p1097_p6), %s173_s23, 256  }
  0x52   : > { %748 = vsyncadd (%p1097_p6), %s173_s23, 4294967040  ;;  %v967_v0 = vld [vmem:[%s176_s29] sm:$0xff]  ;;  %s773_s5 = smov 127   ;;  %v975_v2 = vld [vmem:[%s176_s29 + $0x8] sm:$0xff]  ;;  %s774_s20 = smov 126   ;;  %vm246_vm0 = vcmask 1046528  }
  0x53   : > { %v969_v1 = vld [vmem:[%s167_s3] sm:$0xff]  ;;  %296 = vrot.lane.b32.xlu1 %v967_v0, %s773_s5  ;;  %v977_v3 = vld [vmem:[%s167_s3 + $0x8] sm:$0xff]  ;;  %s775_s6 = smov 125   ;;  %s776_s14 = smov 124   ;;  %vm254_vm1 = vcmask 1045504   ;;  %vm262_vm2 = vcmask 1044480  }
  0x54   : > { %212 = vrot.lane.b32.xlu0 %v969_v1, %s773_s5  ;;  %vm270_vm3 = vcmask 1043456   ;;  %vm282_vm4 = vcmask 1041408   ;;  %s777_s17 = smov 2   ;;  %s572_s28 = sshll.u32 %s954_s30, 3  ;;  %vm451_vm5 = vcmask 58368   ;;  %vm449_vm6 = vcmask 64514  }
  0x55   : > { %s574_s24 = sshll.u32 %s815_s13, 7  ;;  %s201_s26 = scalar_lea.vmem [#allocation7], %s572_s28 }
  0x56   : > { %s467_s27 = sshll.u32 %s201_s26, 4  ;;  %s1042_s8 = scalar_lea.hbm %s1088_s2, %s574_s24  ;;  %s1044_s27 = int_to_ptr.vmem [resolvable:$true] %s467_s27 }
  0x57   : > { %298 = vrot.lane.b32.xlu1 %v975_v2, %s773_s5  ;;  %s454_s16 = scalar_lea.sflag [#allocation4], %s954_s30  ;;  %s697_s13 = scalar_lea.vmem %s1044_s27, 128 }
  0x58   : > { %214 = vrot.lane.b32.xlu0 %v977_v3, %s773_s5  ;;  %p698_p13 = scmp.ne.s32.totalorder %s1044_s27, %s697_s13  ;;  %p1098_p1 = scmp.ne.s32.totalorder %s1093_s21, 0 }
  0x59   : > { %s778_s4 = smov [#allocation7]  }
  0x5a   : > { %p699_p12 = pnand %p698_p13, %p1098_p1  ;;  %s701_s19 = sshll.u32 %s778_s4, 4  ;;  %s702_s19 = int_to_ptr.vmem [resolvable:$false] %s701_s19 }
  0x5b   : > { %222 = vrot.lane.b32.xlu1 %v977_v3, %s774_s20  ;;  %s703_s3 = scalar_lea.vmem %s702_s19, 256  ;;  %p704_p5 = scmp.lt.s32.totalorder %s1044_s27, %s702_s19 }
  0x5c   : > { %220 = vrot.lane.b32.xlu0 %v969_v1, %s774_s20  ;;  %p700_p10 = pneg %p699_p12  ;;  %p705_p7 = scmp.lt.s32.totalorder %s703_s3, %s697_s13 }
  0x5e   : > { %p706_p9 = por %p705_p7, %p704_p5 }
  0x5f   : > { %306 = vrot.lane.b32.xlu1 %v975_v2, %s774_s20 }
  0x60   : > { %304 = vrot.lane.b32.xlu0 %v967_v0, %s774_s20  ;;  %p707_p11 = pnand %p706_p9, %p700_p10 }
  0x63   : > { %230 = vrot.lane.b32.xlu1 %v977_v3, %s775_s6 }
  0x64   : > { %228 = vrot.lane.b32.xlu0 %v969_v1, %s775_s6 }
  0x67   : > { %314 = vrot.lane.b32.xlu1 %v975_v2, %s775_s6 }
  0x68   : > { %312 = vrot.lane.b32.xlu0 %v967_v0, %s775_s6 }
  0x6b   : > { %238 = vrot.lane.b32.xlu1 %v977_v3, %s776_s14 }
  0x6c   : > { %236 = vrot.lane.b32.xlu0 %v969_v1, %s776_s14 }
  0x6f   : > { %322 = vrot.lane.b32.xlu1 %v975_v2, %s776_s14 }
  0x70   : > { %320 = vrot.lane.b32.xlu0 %v967_v0, %s776_s14 }
  0xc5   : > { %v297_v4 = vpop.permute.xlu1 %296 }
  0xc6   : > { %v213_v5 = vpop.permute.xlu0 %212  ;;  %v302_v20 = vadd.f32 %v297_v4, %v967_v0 }
  0xc7   : > { %v218_v14 = vadd.f32 %v213_v5, %v969_v1 }
  0xc9   : > { %v299_v6 = vpop.permute.xlu1 %298 }
  0xca   : > { %v215_v7 = vpop.permute.xlu0 %214  ;;  %v303_v21 = vadd.f32 %v299_v6, %v975_v2 }
  0xcb   : > { %v219_v15 = vadd.f32 %v215_v7, %v977_v3 }
  0xcd   : > { %v223_v8 = vpop.permute.xlu1 %222 }
  0xce   : > { %v221_v9 = vpop.permute.xlu0 %220  ;;  %v227_v18 = vadd.f32 %v223_v8, %v219_v15 }
  0xcf   : > { %v226_v19 = vadd.f32 %v221_v9, %v218_v14 }
  0xd1   : > { %v307_v10 = vpop.permute.xlu1 %306 }
  0xd2   : > { %v305_v11 = vpop.permute.xlu0 %304  ;;  %v311_v24 = vadd.f32 %v307_v10, %v303_v21 }
  0xd3   : > { %v310_v25 = vadd.f32 %v305_v11, %v302_v20 }
  0xd5   : > { %v231_v12 = vpop.permute.xlu1 %230 }
  0xd6   : > { %v229_v13 = vpop.permute.xlu0 %228  ;;  %v235_v22 = vadd.f32 %v231_v12, %v227_v18 }
  0xd7   : > { %v234_v23 = vadd.f32 %v229_v13, %v226_v19 }
  0xd9   : > { %v315_v16 = vpop.permute.xlu1 %314 }
  0xda   : > { %v313_v17 = vpop.permute.xlu0 %312  ;;  %v319_v30 = vadd.f32 %v315_v16, %v311_v24 }
  0xdb   : > { %v318_v31 = vadd.f32 %v313_v17, %v310_v25 }
  0xdd   : > { %v239_v26 = vpop.permute.xlu1 %238 }
  0xde   : > { %v237_v27 = vpop.permute.xlu0 %236  ;;  %v243_v28 = vadd.f32 %v239_v26, %v235_v22 }
  0xdf   : > { %v242_v29 = vadd.f32 %v237_v27, %v234_v23 }
  0xe0   : > { %v248_v32 = vrot.slane %v243_v28, 1  ;;  %v256_v33 = vrot.slane %v243_v28, 2  ;;  %v264_v39 = vrot.slane %v243_v28, 3  ;;  %v272_v47 = vrot.slane %v243_v28, 4 }
  0xe1   : > { %v247_v34 = vrot.slane %v242_v29, 1  ;;  %v255_v35 = vrot.slane %v242_v29, 2  ;;  %v323_v36 = vpop.permute.xlu1 %322  ;;  %v263_v38 = vrot.slane %v242_v29, 3  ;;  %v271_v46 = vrot.slane %v242_v29, 4 }
  0xe2   : > { %v321_v37 = vpop.permute.xlu0 %320  ;;  %v253_v40 = vadd.f32 %v248_v32, %v243_v28  ;;  %v327_v41 = vadd.f32 %v323_v36, %v319_v30 }
  0xe3   : > { %v326_v42 = vadd.f32 %v321_v37, %v318_v31  ;;  %v249_v43 = vsel %vm246_vm0, %v247_v34, %v248_v32  ;;  %v257_v45 = vsel %vm254_vm1, %v255_v35, %v256_v33  ;;  %v265_v53 = vsel %vm262_vm2, %v263_v38, %v264_v39 }
  0xe4   : > { %v252_v44 = vadd.f32 %v249_v43, %v242_v29  ;;  %v331_v48 = vrot.slane %v327_v41, 1  ;;  %v338_v49 = vrot.slane %v327_v41, 2  ;;  %v261_v54 = vadd.f32 %v256_v33, %v253_v40 }
  0xe5   : > { %v330_v50 = vrot.slane %v326_v42, 1  ;;  %v337_v51 = vrot.slane %v326_v42, 2  ;;  %v344_v57 = vrot.slane %v326_v42, 3  ;;  %v345_v58 = vrot.slane %v327_v41, 3 }
  0xe6   : > { %v260_v52 = vadd.f32 %v257_v45, %v252_v44  ;;  %v336_v55 = vadd.f32 %v331_v48, %v327_v41  ;;  %v273_v60 = vsel %vm270_vm3, %v271_v46, %v272_v47  ;;  %v269_v61 = vadd.f32 %v264_v39, %v261_v54 }
  0xe7   : > { %v332_v56 = vsel %vm246_vm0, %v330_v50, %v331_v48  ;;  %v339_v63 = vsel %vm254_vm1, %v337_v51, %v338_v49  ;;  %v351_v4 = vrot.slane %v326_v42, 4  ;;  %v352_v5 = vrot.slane %v327_v41, 4 }
  0xe8   : > { %v268_v59 = vadd.f32 %v265_v53, %v260_v52  ;;  %v335_v62 = vadd.f32 %v332_v56, %v326_v42  ;;  %v343_v6 = vadd.f32 %v338_v49, %v336_v55  ;;  %v277_v8 = vadd.f32 %v272_v47, %v269_v61 }
  0xe9   : > { %v346_v10 = vsel %vm262_vm2, %v344_v57, %v345_v58  ;;  %v353_v15 = vsel %vm270_vm3, %v351_v4, %v352_v5 }
  0xea   : > { %v276_v7 = vadd.f32 %v273_v60, %v268_v59  ;;  %v342_v9 = vadd.f32 %v339_v63, %v335_v62  ;;  %v350_v11 = vadd.f32 %v345_v58, %v343_v6  ;;  %v279_v13 = vmul.f32 0.04, %v277_v8 }
  0xec   : > { %v278_v12 = vmul.f32 0.04, %v276_v7  ;;  %v349_v14 = vadd.f32 %v346_v10, %v342_v9  ;;  %v357_v16 = vadd.f32 %v352_v5, %v350_v11  ;;  %v284_v18 = vrot.slane %v279_v13, 6 }
  0xee   : > { %v283_v17 = vrot.slane %v278_v12, 6  ;;  %v356_v19 = vadd.f32 %v353_v15, %v349_v14  ;;  %v359_v20 = vmul.f32 0.04, %v357_v16 }
  0xf0   : > { %286 = vrot.lane.b32.xlu0 %v283_v17, %s777_s17  ;;  %v285_v21 = vsel %vm282_vm4, %v283_v17, %v284_v18  ;;  %v358_v22 = vmul.f32 0.04, %v356_v19  ;;  %v363_v23 = vrot.slane %v359_v20, 6 }
  0xf1   : > { %288 = vrot.lane.b32.xlu1 %v285_v21, %s777_s17 }
  0xf2   : > { %v362_v24 = vrot.slane %v358_v22, 6 }
  0xf4   : > { %365 = vrot.lane.b32.xlu0 %v362_v24, %s777_s17  ;;  %v364_v25 = vsel %vm282_vm4, %v362_v24, %v363_v23 }
  0xf5   : > { %367 = vrot.lane.b32.xlu1 %v364_v25, %s777_s17 }
 0x162   : > { %v287_v26 = vpop.permute.xlu0 %286 }
 0x163   : > { %v289_v27 = vpop.permute.xlu1 %288  ;;  %v292_v29 = vsub.f32 %v969_v1, %v287_v26 }
 0x164   : > { %v293_v32 = vsub.f32 %v977_v3, %v289_v27 }
 0x166   : > { %v366_v28 = vpop.permute.xlu0 %365 }
 0x167   : > { %v371_v30 = vsub.f32 %v967_v0, %v366_v28  ;;  %v368_v31 = vpop.permute.xlu1 %367 }
 0x168   : > { %v372_v33 = vsub.f32 %v975_v2, %v368_v31 }
 0x169   : > { %v373_v34 = vmul.f32 %v371_v30, %v292_v29 }
 0x16a   : > { %v374_v35 = vmul.f32 %v372_v33, %v293_v32 }
 0x16b   : > { %377 = vrot.lane.b32.xlu0 %v373_v34, %s773_s5 }
 0x16c   : > { %379 = vrot.lane.b32.xlu1 %v374_v35, %s773_s5 }
 0x16f   : > { %385 = vrot.lane.b32.xlu0 %v373_v34, %s774_s20 }
 0x170   : > { %387 = vrot.lane.b32.xlu1 %v374_v35, %s774_s20 }
 0x173   : > { %393 = vrot.lane.b32.xlu0 %v373_v34, %s775_s6 }
 0x174   : > { %395 = vrot.lane.b32.xlu1 %v374_v35, %s775_s6 }
 0x177   : > { %401 = vrot.lane.b32.xlu0 %v373_v34, %s776_s14 }
 0x178   : > { %403 = vrot.lane.b32.xlu1 %v374_v35, %s776_s14 }
 0x1dd   : > { %v378_v0 = vpop.permute.xlu0 %377 }
 0x1de   : > { %v380_v1 = vpop.permute.xlu1 %379  ;;  %v383_v36 = vadd.f32 %v378_v0, %v373_v34 }
 0x1df   : > { %v384_v37 = vadd.f32 %v380_v1, %v374_v35 }
 0x1e1   : > { %v386_v2 = vpop.permute.xlu0 %385 }
 0x1e2   : > { %v388_v3 = vpop.permute.xlu1 %387  ;;  %v391_v39 = vadd.f32 %v386_v2, %v383_v36 }
 0x1e3   : > { %v392_v41 = vadd.f32 %v388_v3, %v384_v37 }
 0x1e5   : > { %v394_v38 = vpop.permute.xlu0 %393 }
 0x1e6   : > { %v396_v40 = vpop.permute.xlu1 %395  ;;  %v399_v42 = vadd.f32 %v394_v38, %v391_v39 }
 0x1e7   : > { %v400_v43 = vadd.f32 %v396_v40, %v392_v41 }
 0x1e9   : > { %v402_v44 = vpop.permute.xlu0 %401 }
 0x1ea   : > { %v407_v45 = vadd.f32 %v402_v44, %v399_v42  ;;  %v404_v46 = vpop.permute.xlu1 %403 }
 0x1eb   : > { %v408_v47 = vadd.f32 %v404_v46, %v400_v43 }
 0x1ec   : > { %v411_v48 = vrot.slane %v407_v45, 1  ;;  %v418_v49 = vrot.slane %v407_v45, 2  ;;  %v425_v55 = vrot.slane %v407_v45, 3  ;;  %v432_v60 = vrot.slane %v407_v45, 4 }
 0x1ed   : > { %v412_v50 = vrot.slane %v408_v47, 1  ;;  %v419_v51 = vrot.slane %v408_v47, 2  ;;  %v426_v53 = vrot.slane %v408_v47, 3  ;;  %v433_v58 = vrot.slane %v408_v47, 4 }
 0x1ef   : > { %v417_v52 = vadd.f32 %v412_v50, %v408_v47  ;;  %v413_v54 = vsel %vm246_vm0, %v411_v48, %v412_v50  ;;  %v420_v59 = vsel %vm254_vm1, %v418_v49, %v419_v51  ;;  %v427_v63 = vsel %vm262_vm2, %v425_v55, %v426_v53 }
 0x1f0   : > { %v416_v56 = vadd.f32 %v413_v54, %v407_v45  ;;  %v434_v6 = vsel %vm270_vm3, %v432_v60, %v433_v58 }
 0x1f1   : > { %v424_v57 = vadd.f32 %v419_v51, %v417_v52 }
 0x1f2   : > { %v423_v61 = vadd.f32 %v420_v59, %v416_v56 }
 0x1f3   : > { %v431_v62 = vadd.f32 %v426_v53, %v424_v57 }
 0x1f4   : > { %v430_v4 = vadd.f32 %v427_v63, %v423_v61 }
 0x1f5   : > { %v438_v5 = vadd.f32 %v433_v58, %v431_v62 }
 0x1f6   : > { %v437_v7 = vadd.f32 %v434_v6, %v430_v4 }
 0x1f7   : > { %v440_v8 = vmul.f32 0.04, %v438_v5 }
 0x1f8   : > { %v439_v9 = vmul.f32 0.04, %v437_v7 }
 0x1f9   : > { %445 = vrot.lane.b32.xlu1 %v440_v8, %s774_s20 }
 0x1fa   : > { %443 = vrot.lane.b32.xlu0 %v439_v9, %s774_s20 }
 0x26b   : > { %v446_v10 = vpop.permute.xlu1 %445 }
 0x26c   : > { %452 = vst.msk [vmem:[%s201_s26 + $0x6] sm:$0x3] %vm451_vm5, %v446_v10  ;;  %v444_v11 = vpop.permute.xlu0 %443 }
 0x26d   : > { %450 = vst.msk [vmem:[%s201_s26 - $0x2] sm:$0xfc] %vm449_vm6, %v444_v11 }
 0x26e   : > { %710 = shalt.err (!%p707_p11)
}
 0x26f   : > { %s711_s30 = scalar_lea.hbm %s1042_s8, 128  ;;  %s715_s5 = scalar_lea.hbm %s1088_s2, 256 }
 0x270   : > { %p712_p3 = scmp.ne.s32.totalorder %s1042_s8, %s711_s30  ;;  %p716_p2 = scmp.lt.u32.totalorder %s1042_s8, %s1088_s2 }
 0x271   : > { %p717_p4 = scmp.lt.u32.totalorder %s715_s5, %s711_s30  ;;  %p719_p13 = scmp.lt.u32.totalorder %s711_s30, %s1042_s8 }
 0x272   : > { %p713_p8 = pnand %p712_p3, %p1098_p1 }
 0x273   : > { %p718_p6 = por %p717_p4, %p716_p2 }
 0x274   : > { %p714_p0 = pneg %p713_p8 }
 0x275   : > { %p720_p12 = por %p719_p13, %p718_p6 }
 0x277   : > { %p721_p10 = pnand %p720_p12, %p714_p0 }
 0x279   : > { %724 = shalt.err (!%p721_p10)
}
 0x27a   : > { %583 = dma.vmem_to_hbm [thread:$0]  (%p1098_p1), %s1044_s27, 128, %s1042_s8, %s454_s16  }
 0x27b PF: > { %s479_s14 = sand.u32 1, %s755_s9   ;;  %p1099_p5 = scmp.ne.s32.totalorder %s1094_s22, 0 }
 0x27c   : > { %p1100_p7 = scmp.ge.s32.totalorder %s767_s12, 2  ;;  %s480_s17 = scalar_lea.sflag [#allocation4], %s479_s14 }
 0x27e   : > { %p593_p9 = pnand %p1100_p7, %p1099_p5 }
 0x280   : > { %750 = dma.done.wait (!%p593_p9), %s480_s17, 128  }
 0x281   : > { %752 = vsyncadd (!%p593_p9), %s480_s17, 4294967168  ;;  %p18_p11 = scmp.ge.s32.totalorder %s819_s15, 4   ;;  %s1101_s9 = smov %s759_s10 }
 0x282   : > { %s1102_s10 = smov %s763_s11  ;;  %s1103_s11 = smov %s831_s18 }
 0x283   : > { %s1104_s12 = smov %s819_s15  ;;  %20 = sbr.rel (!%p18_p11) target bundleno = 7 (0x7), region = 86 }
 0x28a   :  { %485 = vsyncpa [#allocation3], 1 }
 0x28b   :  { %487 = vsyncpa [#allocation3 + $0x1], 1 }
 0x28c   :  { %488 = vsyncpa [#allocation6], 1 }
 0x28d   :  { %490 = vsyncpa [#allocation6 + $0x1], 1 }
 0x28e   :  { %491 = vsyncpa [#allocation4], 1 }
 0x28f   :  { %493 = vsyncpa [#allocation4 + $0x1], 1 }

</bundles_post_ra>
